<compile_context>
chip_gen: v6e
topology: v6e:2x2x1
jax: 0.10.0
libtpu: 0.0.40
codegen_flags: <defaults>
</compile_context>

<pallas_src>
import jax
import jax.numpy as jnp
from jax.experimental import pallas as pl
from jax.experimental.pallas import tpu as pltpu


def _round_up(n, m):
    return (n + m - 1) // m * m


# ---------------------------------------------------------------------------
# BahdanauAttention.compute_cache: keys = memory @ wk + bk, computed once per
# sequence.  Grid over batch, marked "parallel" (shards across TCs on v7x).
# ---------------------------------------------------------------------------
def _key_cache_kernel(mem_ref, wk_ref, bk_ref, keys_ref):
    keys_ref[...] = (
        jnp.dot(mem_ref[...], wk_ref[...], preferred_element_type=jnp.float32)
        + bk_ref[...])


def compute_cache(memory, params):
    B, T, C = memory.shape
    A = params["wk"].shape[1]
    return pl.pallas_call(
        _key_cache_kernel,
        grid=(B,),
        in_specs=[
            pl.BlockSpec((None, T, C), lambda b: (b, 0, 0)),
            pl.BlockSpec((C, A), lambda b: (0, 0)),
            pl.BlockSpec((1, A), lambda b: (0, 0)),
        ],
        out_specs=pl.BlockSpec((None, T, A), lambda b: (b, 0, 0)),
        out_shape=jax.ShapeDtypeStruct((B, T, A), jnp.float32),
        compiler_params=pltpu.CompilerParams(dimension_semantics=("parallel",)),
    )(memory, params["wk"], params["bk"])


# ---------------------------------------------------------------------------
# GRU1 input projection hoisted out of the recurrence: xproj[s] = xs[s] @ W1x
# for every decode step, computed in parallel (grid over steps).
# ---------------------------------------------------------------------------
def _xproj_kernel(x_ref, w_ref, out_ref):
    out_ref[...] = jnp.dot(x_ref[...], w_ref[...],
                           preferred_element_type=jnp.float32)


def project_inputs(xs, w1x):
    S, B, I = xs.shape
    Hp4 = w1x.shape[1]
    return pl.pallas_call(
        _xproj_kernel,
        grid=(S,),
        in_specs=[
            pl.BlockSpec((None, B, I), lambda s: (s, 0, 0)),
            pl.BlockSpec((I, Hp4), lambda s: (0, 0)),
        ],
        out_specs=pl.BlockSpec((None, B, Hp4), lambda s: (s, 0, 0)),
        out_shape=jax.ShapeDtypeStruct((S, B, Hp4), jnp.float32),
        compiler_params=pltpu.CompilerParams(dimension_semantics=("parallel",)),
    )(xs, w1x)


# ---------------------------------------------------------------------------
# Host-side (once per model) GRU weight packing into a lane-tile-aligned layout:
#   columns [0:H)          -> r    (input+hidden weights, biases pre-summed)
#   columns [Hp:Hp+H)      -> z    (input+hidden weights, biases pre-summed)
#   columns [2Hp:2Hp+H)    -> gi_n (input path only)
#   columns [3Hp:3Hp+H)    -> gh_n (hidden path only)
# with Hp = round_up(H, 128) so every gate slice starts at a 128-lane boundary.
# ---------------------------------------------------------------------------
def pack_gru_params(wi, wh, bi, bh):
    In, H3 = wi.shape
    H = H3 // 3
    Hp = _round_up(H, 128)
    Wx = jnp.zeros((In, 4 * Hp), jnp.float32)
    Wh = jnp.zeros((H, 4 * Hp), jnp.float32)
    b = jnp.zeros((1, 4 * Hp), jnp.float32)
    # r gate
    Wx = Wx.at[:, 0:H].set(wi[:, 0:H])
    Wh = Wh.at[:, 0:H].set(wh[:, 0:H])
    b = b.at[:, 0:H].set(bi[:, 0:H] + bh[:, 0:H])
    # z gate
    Wx = Wx.at[:, Hp:Hp + H].set(wi[:, H:2 * H])
    Wh = Wh.at[:, Hp:Hp + H].set(wh[:, H:2 * H])
    b = b.at[:, Hp:Hp + H].set(bi[:, H:2 * H] + bh[:, H:2 * H])
    # gi_n (input path of the n gate)
    Wx = Wx.at[:, 2 * Hp:2 * Hp + H].set(wi[:, 2 * H:3 * H])
    b = b.at[:, 2 * Hp:2 * Hp + H].set(bi[:, 2 * H:3 * H])
    # gh_n (hidden path of the n gate)
    Wh = Wh.at[:, 3 * Hp:3 * Hp + H].set(wh[:, 2 * H:3 * H])
    b = b.at[:, 3 * Hp:3 * Hp + H].set(bh[:, 2 * H:3 * H])
    return Wx, Wh, b


# ---------------------------------------------------------------------------
# Fused decode kernel: one grid step == one CGRUCell application.
# Hidden state is carried across steps in a VMEM scratch accumulator.
# ---------------------------------------------------------------------------
def _cgru_decode_kernel(xp_ref, h0_ref, keys_ref, mem_ref, mask_ref,
                        w1h_ref, b1_ref,
                        wq_ref, bq_ref, v_ref,
                        w2x_ref, w2h_ref, b2_ref,
                        hs_ref, attn_ref,
                        h_sc):
    H = h0_ref.shape[1]
    Hp = b1_ref.shape[1] // 4           # 128-aligned gate stride

    @pl.when(pl.program_id(0) == 0)
    def _():
        h_sc[...] = h0_ref[...]

    def gru(xg, h, wh, b):
        # xg: precomputed input-to-hidden gates in the packed layout
        # [r | z | gi_n | gh_n], every gate at a 128-lane-aligned offset.
        g = xg + jnp.dot(h, wh, preferred_element_type=jnp.float32) + b
        r = jax.nn.sigmoid(g[:, 0:H])
        z = jax.nn.sigmoid(g[:, Hp:Hp + H])
        n = jnp.tanh(g[:, 2 * Hp:2 * Hp + H] + r * g[:, 3 * Hp:3 * Hp + H])
        return (1.0 - z) * n + z * h

    h_prev = h_sc[...]                                        # (B, H) carried hidden

    # ---- GRU cell 1 (input projection precomputed outside the recurrence) ----
    h1 = gru(xp_ref[...], h_prev, w1h_ref[...], b1_ref[...])

    # ---- Bahdanau attention (keys precomputed by compute_cache) ----
    q = jnp.dot(h1, wq_ref[...], preferred_element_type=jnp.float32) + bq_ref[...]   # (B, A)
    e = jnp.tanh(keys_ref[...] + q[:, None, :])                                      # (B, T, A)
    scores = jnp.sum(e * v_ref[...][None, :, :], axis=-1)                            # (B, T) lane-dense
    scores = jnp.where(mask_ref[...] > 0.0, scores, jnp.float32(-1e9))
    m = jnp.max(scores, axis=-1, keepdims=True)                                      # (B, 1)
    p = jnp.exp(scores - m)
    l = jnp.sum(p, axis=-1, keepdims=True)                                           # (B, 1)
    aw = p * pl.reciprocal(l, approx=True)                                           # (B, T)
    # Weighted sum over the context as a batched (B,1,T) x (B,T,C) MXU matmul.
    attn = jnp.einsum("bqt,btc->bqc", aw[:, None, :], mem_ref[...],
                      preferred_element_type=jnp.float32)[:, 0, :]                   # (B, C)

    # ---- GRU cell 2 (input is the data-dependent attention output) ----
    xg2 = jnp.dot(attn, w2x_ref[...], preferred_element_type=jnp.float32)
    h2 = gru(xg2, h1, w2h_ref[...], b2_ref[...])

    h_sc[...] = h2
    hs_ref[...] = h2
    attn_ref[...] = attn


def _const_spec(shape):
    nd = len(shape)
    return pl.BlockSpec(shape, lambda s, _nd=nd: (0,) * _nd)


def cgru_decode(xs, h0, memory, mask, params, cache=None):
    """Apply CGRUCell recurrently over xs (S, B, I) in a single pallas_call.

    Returns (hs (S,B,H), attns (S,B,C), h_last (B,H)); step s of hs/attns equals
    the PyTorch CGRUCell.forward outputs at that step.
    """
    S, B, I = xs.shape
    H = h0.shape[1]
    _, T, C = memory.shape
    A = params["wq"].shape[1]

    if mask is None:
        mask2d = jnp.ones((B, T), jnp.float32)
    else:
        mask2d = mask.reshape(B, T).astype(jnp.float32)       # lane-dense mask

    keys = compute_cache(memory, params) if cache is None else cache

    # Packed once per model in practice; cheap host-side layout plumbing here.
    w1x, w1h, b1 = pack_gru_params(params["w1i"], params["w1h"], params["b1i"], params["b1h"])
    w2x, w2h, b2 = pack_gru_params(params["w2i"], params["w2h"], params["b2i"], params["b2h"])
    Hp4 = b1.shape[1]

    # GRU1 input projection for all steps, hoisted off the sequential critical path.
    xproj = project_inputs(xs, w1x)                            # (S, B, 4*Hp)

    hs, attns = pl.pallas_call(
        _cgru_decode_kernel,
        grid=(S,),
        in_specs=[
            pl.BlockSpec((None, B, Hp4), lambda s: (s, 0, 0)),  # xproj: one step / iter
            _const_spec((B, H)),                                # h0 (used at step 0 only)
            _const_spec((B, T, A)),                             # cached keys, VMEM-resident
            _const_spec((B, T, C)),                             # context, VMEM-resident
            _const_spec((B, T)),                                # mask, lane-dense
            _const_spec((H, Hp4)),                              # gru1 packed hidden weights
            _const_spec((1, Hp4)),                              # gru1 packed bias
            _const_spec((H, A)),                                # attention wq
            _const_spec((1, A)),                                # attention bq
            _const_spec((1, A)),                                # attention v
            _const_spec((C, Hp4)),                              # gru2 packed input weights
            _const_spec((H, Hp4)),                              # gru2 packed hidden weights
            _const_spec((1, Hp4)),                              # gru2 packed bias
        ],
        out_specs=(pl.BlockSpec((None, B, H), lambda s: (s, 0, 0)),
                   pl.BlockSpec((None, B, C), lambda s: (s, 0, 0))),
        out_shape=(jax.ShapeDtypeStruct((S, B, H), jnp.float32),
                   jax.ShapeDtypeStruct((S, B, C), jnp.float32)),
        scratch_shapes=[pltpu.VMEM((B, H), jnp.float32)],       # recurrent hidden carry
        compiler_params=pltpu.CompilerParams(
            # Recurrent carry across the step axis -> must stay sequential.
            # At production batch sizes add a leading "parallel" batch axis (v7x 2 TCs)
            # and set vmem_limit_bytes per-generation (see header notes).
            dimension_semantics=("arbitrary",)),
    )(xproj, h0, keys, memory, mask2d,
      w1h, b1,
      params["wq"], params["bq"], params["v"],
      w2x, w2h, b2)

    return hs, attns, hs[-1]


def cgru_cell(x, h, context, context_mask, params, cache=None):
    """Single-step CGRUCell.forward: returns ((hidden2, attn_values), hidden2)."""
    hs, attns, _ = cgru_decode(x[None], h, context, context_mask, params, cache=cache)
    h2, attn = hs[0], attns[0]
    return (h2, attn), h2


# ---------------------------------------------------------------------------
# Pure-JAX reference mirroring the PyTorch CGRUCell forward (single step).
# ---------------------------------------------------------------------------
def cgru_ref_step(x, h, memory, mask2d, p):
    H = h.shape[1]

    def gru(x, h, wi, wh, bi, bh):
        gi = x @ wi + bi
        gh = h @ wh + bh
        r = jax.nn.sigmoid(gi[:, :H] + gh[:, :H])
        z = jax.nn.sigmoid(gi[:, H:2 * H] + gh[:, H:2 * H])
        n = jnp.tanh(gi[:, 2 * H:] + r * gh[:, 2 * H:])
        return (1.0 - z) * n + z * h

    h1 = gru(x, h, p["w1i"], p["w1h"], p["b1i"], p["b1h"])
    q = h1 @ p["wq"] + p["bq"]
    keys = jnp.einsum("btc,ca->bta", memory, p["wk"]) + p["bk"][None]
    e = jnp.tanh(keys + q[:, None, :])
    s = jnp.sum(e * p["v"][None], axis=-1)
    s = jnp.where(mask2d > 0.0, s, -1e9)
    w = jax.nn.softmax(s, axis=-1)
    attn = jnp.einsum("bt,btc->bc", w, memory)
    h2 = gru(attn, h1, p["w2i"], p["w2h"], p["b2i"], p["b2h"])
    return h2, attn


if __name__ == "__main__":
    # input_size=16, hidden_size=32, context_size=32, attn dim=32, T=8 memory steps,
    # S=6 decode steps.
    B, I, H, C, A, T, S = 2, 16, 32, 32, 32, 8, 6

    key = jax.random.PRNGKey(0)
    ks = jax.random.split(key, 20)
    std = 0.1

    # Deterministic synthetic parameters (nn.GRUCell weights pre-transposed to
    # (in_features, 3H), gate order (r, z, n); biases kept 2-D).
    params = {
        "w1i": std * jax.random.normal(ks[0], (I, 3 * H), jnp.float32),
        "w1h": std * jax.random.normal(ks[1], (H, 3 * H), jnp.float32),
        "b1i": std * jax.random.normal(ks[2], (1, 3 * H), jnp.float32),
        "b1h": std * jax.random.normal(ks[3], (1, 3 * H), jnp.float32),
        "wq":  std * jax.random.normal(ks[4], (H, A), jnp.float32),
        "bq":  std * jax.random.normal(ks[5], (1, A), jnp.float32),
        "wk":  std * jax.random.normal(ks[6], (C, A), jnp.float32),
        "bk":  std * jax.random.normal(ks[7], (1, A), jnp.float32),
        "v":   std * jax.random.normal(ks[8], (1, A), jnp.float32),
        "w2i": std * jax.random.normal(ks[9], (C, 3 * H), jnp.float32),
        "w2h": std * jax.random.normal(ks[10], (H, 3 * H), jnp.float32),
        "b2i": std * jax.random.normal(ks[11], (1, 3 * H), jnp.float32),
        "b2h": std * jax.random.normal(ks[12], (1, 3 * H), jnp.float32),
    }

    xs = jax.random.normal(ks[13], (S, B, I), jnp.float32)          # decode-step inputs
    hidden = jax.random.normal(ks[14], (B, H), jnp.float32)
    context = jax.random.normal(ks[15], (B, T, C), jnp.float32)
    # Mask the last two context timesteps of batch element 1 to exercise masking.
    context_mask = jnp.ones((B, T, 1), jnp.float32).at[1, T - 2:, :].set(0.0)

    # Key cache computed once per sequence (BahdanauAttention.compute_cache).
    cache = compute_cache(context, params)

    # Fused multi-step decode: one pallas_call for the whole recurrence.
    hs, attns, h_last = cgru_decode(xs, hidden, context, context_mask, params, cache=cache)
    jax.block_until_ready((hs, attns, h_last))

    # Step-by-step pure-JAX reference.
    mask2d = context_mask.reshape(B, T)
    h = hidden
    hs_ref, attns_ref = [], []
    for s in range(S):
        h, attn = cgru_ref_step(xs[s], h, context, mask2d, params)
        hs_ref.append(h)
        attns_ref.append(attn)
    hs_ref = jnp.stack(hs_ref)
    attns_ref = jnp.stack(attns_ref)

    # Tolerance covers the EUP approximate-reciprocal softmax accumulated over S steps;
    # any semantic bug is orders of magnitude larger.
    assert jnp.allclose(hs, hs_ref, atol=5e-3, rtol=5e-3)
    assert jnp.allclose(attns, attns_ref, atol=5e-3, rtol=5e-3)
    assert jnp.allclose(h_last, hs_ref[-1], atol=5e-3, rtol=5e-3)

    # Single-cell API matches CGRUCell.forward: ((hidden2, attn_values), hidden2).
    (h2, attn0), out = cgru_cell(xs[0], hidden, context, context_mask, params, cache=cache)
    jax.block_until_ready((h2, attn0, out))
    assert jnp.allclose(h2, hs_ref[0], atol=5e-3, rtol=5e-3)
    assert jnp.allclose(attn0, attns_ref[0], atol=5e-3, rtol=5e-3)
    assert jnp.allclose(out, h2, atol=0, rtol=0)

    print("KERNEL_OK")
</pallas_src>

<mosaic_0001>
module attributes {stable_mosaic.version = 11 : i64} {
  func.func @_key_cache_kernel(%arg0: i32, %arg1: memref<1x8x32xf32, #tpu.memory_space<vmem>>, %arg2: memref<32x32xf32, #tpu.memory_space<vmem>>, %arg3: memref<1x32xf32, #tpu.memory_space<vmem>>, %arg4: memref<1x8x32xf32, #tpu.memory_space<vmem>>) attributes {dimension_semantics = [#tpu.dimension_semantics<parallel>], iteration_bounds = array<i64: 2>, scalar_prefetch = 0 : i64, scratch_operands = 0 : i64, tpu.core_type = #tpu.core_type<tc>, window_params = [{transform_indices = @transform_0, window_bounds = array<i64: 1, 8, 32>}, {pipeline_mode = #tpu.pipeline_mode<synchronous>, transform_indices = @transform_1, window_bounds = array<i64: 32, 32>}, {pipeline_mode = #tpu.pipeline_mode<synchronous>, transform_indices = @transform_2, window_bounds = array<i64: 1, 32>}, {transform_indices = @transform_3, window_bounds = array<i64: 1, 8, 32>}]} {
    %c0 = arith.constant 0 : index
    %c0_0 = arith.constant 0 : index
    %c0_1 = arith.constant 0 : index
    %0 = vector.load %arg1[%c0, %c0_0, %c0_1] : memref<1x8x32xf32, #tpu.memory_space<vmem>>, vector<1x8x32xf32>
    %1 = vector.shape_cast %0 : vector<1x8x32xf32> to vector<8x32xf32>
    %c0_2 = arith.constant 0 : index
    %c0_3 = arith.constant 0 : index
    %2 = vector.load %arg2[%c0_2, %c0_3] : memref<32x32xf32, #tpu.memory_space<vmem>>, vector<32x32xf32>
    %cst = arith.constant dense<0.000000e+00> : vector<8x32xf32>
    %3 = tpu.matmul %1, %2, %cst {dimension_numbers = #tpu.dot_dimension_numbers<[1], [0], [0], [1], [0, 0, 1, 1], [], []>} : vector<8x32xf32>, vector<32x32xf32>, vector<8x32xf32> -> vector<8x32xf32>
    %c0_4 = arith.constant 0 : index
    %c0_5 = arith.constant 0 : index
    %4 = vector.load %arg3[%c0_4, %c0_5] : memref<1x32xf32, #tpu.memory_space<vmem>>, vector<1x32xf32>
    %5 = vector.broadcast %4 : vector<1x32xf32> to vector<8x32xf32>
    %6 = arith.addf %3, %5 : vector<8x32xf32>
    %c0_6 = arith.constant 0 : index
    %c0_7 = arith.constant 0 : index
    %c0_8 = arith.constant 0 : index
    %7 = vector.load %arg4[%c0_6, %c0_7, %c0_8] : memref<1x8x32xf32, #tpu.memory_space<vmem>>, vector<1x8x32xf32>
    %8 = vector.shape_cast %7 : vector<1x8x32xf32> to vector<8x32xf32>
    %9 = vector.shape_cast %6 : vector<8x32xf32> to vector<1x8x32xf32>
    tpu.vector_store %arg4[%c0_6, %c0_7, %c0_8], %9 {strides = array<i32>} : memref<1x8x32xf32, #tpu.memory_space<vmem>>, vector<1x8x32xf32>,
    return
  }
  func.func @transform_0(%arg0: i32) -> (i32, i32, i32) {
    %c0_i32 = arith.constant 0 : i32
    %c0_i32_0 = arith.constant 0 : i32
    %c0_i32_1 = arith.constant 0 : i32
    return %arg0, %c0_i32, %c0_i32_0 : i32, i32, i32
  }
  func.func @transform_1(%arg0: i32) -> (i32, i32) {
    %c0_i32 = arith.constant 0 : i32
    %c0_i32_0 = arith.constant 0 : i32
    %c0_i32_1 = arith.constant 0 : i32
    return %c0_i32, %c0_i32_0 : i32, i32
  }
  func.func @transform_2(%arg0: i32) -> (i32, i32) {
    %c0_i32 = arith.constant 0 : i32
    %c0_i32_0 = arith.constant 0 : i32
    %c0_i32_1 = arith.constant 0 : i32
    return %c0_i32, %c0_i32_0 : i32, i32
  }
  func.func @transform_3(%arg0: i32) -> (i32, i32, i32) {
    %c0_i32 = arith.constant 0 : i32
    %c0_i32_0 = arith.constant 0 : i32
    %c0_i32_1 = arith.constant 0 : i32
    return %arg0, %c0_i32, %c0_i32_0 : i32, i32, i32
  }
}

</mosaic_0001>

<bundles_post_ra>
// kernel: tpu_custom_call.1
= control target key start
LH: loop header
LB: loop body
LE: loop exit
PB: predicated region body
PF: predicated region fallthrough
CT: control target
= control target key end

     0   :  { %8 = vsyncpa [#allocation3], 0  ;;  %s789_s0 = inlined_call_operand.hbm [shape: f32[2,8,32], index: 0, kind: input, shape index: {}]   ;;  %s790_s1 = inlined_call_operand.hbm [shape: f32[32,32], index: 1, kind: input, shape index: {}]   ;;  %s791_s2 = inlined_call_operand.vmem [shape: f32[1,32], index: 2, kind: input, shape index: {}]   ;;  %s792_s3 = inlined_call_operand.hbm [shape: f32[2,8,32], index: 3, kind: output, shape index: {}]  }
   0x1   :  { %10 = vsyncpa [#allocation3 + $0x1], 0 }
   0x2   :  { %11 = vsyncpa [#allocation6], 0 }
   0x3   :  { %12 = vsyncpa [#allocation4], 0 }
   0x4   :  { %14 = vsyncpa [#allocation4 + $0x1], 0  ;;  %s626_s12 = smov 0   ;;  %s628_s13 = smov 0  }
   0x5   :  { %s630_s14 = smov 0   ;;  %s632_s15 = smov 0  }
   0x6 LB: > { %s647_s16 = sadd.s32 4294967295, %s597_s15   ;;  %s382_s17 = sadd.s32 4294967294, %s597_s15   ;;  %s597_s15 = sphi %s632_s15, %s814_s15   ;;  %s593_s14 = sphi %s630_s14, %s813_s14   ;;  %s589_s13 = sphi %s628_s13, %s812_s13   ;;  %s585_s12 = sphi %s626_s12, %s811_s12  }
   0x7   : > { %p40_p0 = scmp.ne.s32.totalorder %s589_s13, %s585_s12  ;;  %p793_p1 = scmp.eq.s32.totalorder %s647_s16, 0 }
   0x8   : > { %p112_p3 = scmp.eq.s32.totalorder %s382_s17, 1  ;;  %p383_p5 = scmp.ge.s32.totalorder %s597_s15, 1 }
   0x9   : > { %p656_p4 = por %p793_p1, %p40_p0  ;;  %p119_p7 = scmp.lt.s32.totalorder %s597_s15, 3 }
   0xa   : > { %p661_p6 = por %p112_p3, %p40_p0  ;;  %s599_s21 = smov [#allocation5]  }
   0xb   : > { %s797_s18 = scalar_select %p656_p4, 1, 0 }
   0xc   : > { %s798_s19 = scalar_select %p661_p6, 1, 0 }
   0xd   : > { %p666_p8 = pnand %p383_p5, %p119_p7  ;;  %s131_s22 = sshll.u32 %s599_s21, 4  ;;  %s132_s22 = int_to_ptr.vmem [resolvable:$true] %s131_s22 }
   0xe   : > { %s680_s24 = sadd.s32 1, %s597_s15   ;;  %s27_s25 = sadd.s32 1, %s593_s14 }
   0xf   : > { %s799_s20 = scalar_select %p666_p8, 1, 0 }
  0x10   : > { %p422_p9 = pneg %p666_p8  ;;  %s24_s26 = ssub.s32 %s597_s15, %s680_s24 }
  0x11   : > { %s486_s27 = scalar_lea.vmem %s132_s22, 512  ;;  %p494_p5 = scmp.lt.s32.totalorder %s132_s22, %s132_s22 }
  0x12   : > { %p675_p11 = pnand %p422_p9, %p793_p1  ;;  %p487_p13 = scmp.ne.s32.totalorder %s132_s22, %s486_s27 }
  0x13   : > { %p495_p7 = scmp.lt.s32.totalorder %s486_s27, %s486_s27 }
  0x14   : > { %p477_p12 = pneg %p675_p11 }
  0x15   : > { %p496_p10 = por %p495_p7, %p494_p5 }
  0x16   : > { %p489_p0 = pnand %p487_p13, %p477_p12 }
  0x18   : > { %p490_p3 = pneg %p489_p0 }
  0x1a   : > { %p497_p2 = pnand %p496_p10, %p490_p3 }
  0x1c   : > { %500 = shalt.err (!%p497_p2)
}
  0x1d   : > { %s600_s28 = smov 128   ;;  %s601_s29 = smov 8  }
  0x1e   : > { %425 = dma.hbm_to_vmem [thread:$0]  (!%p675_p11), %s790_s1, 512, %s132_s22, [#allocation6], %s600_s28, %s600_s28, %s601_s29  }
  0x1f   : > { %p25_p9 = scmp.eq.s32.totalorder %s24_s26, 0  ;;  %p34_p12 = scmp.ne.s32.totalorder %s593_s14, %s589_s13 }
  0x20   : > { %p35_p10 = scmp.eq.s32.totalorder %s597_s15, 0  ;;  %p435_p2 = scmp.lt.s32.totalorder %s597_s15, 2 }
  0x21   : > { %s697_s5 = scalar_select %p25_p9, %s593_s14, %s27_s25  }
  0x22   : > { %p36_p13 = por %p35_p10, %p34_p12  ;;  %p801_p0 = scmp.eq.s32.totalorder %s647_s16, 1 }
  0x23   : > { %s148_s7 = sand.u32 1, %s593_s14   ;;  %s387_s8 = sshll.u32 %s597_s15, 7 }
  0x24   : > { %p701_p3 = por %p801_p0, %p34_p12  ;;  %s386_s9 = sshll.u32 %s148_s7, 3 }
  0x25   : > { %s710_s17 = scalar_lea.hbm %s789_s0, %s387_s8  ;;  %s152_s21 = scalar_lea.vmem [#allocation2], %s386_s9 }
  0x26   : > { %s802_s6 = scalar_select %p701_p3, 1, 0 }
  0x27   : > { %s159_s22 = sshll.u32 %s152_s21, 4  ;;  %p712_p11 = pnand %p435_p2, %p36_p13  ;;  %s160_s22 = int_to_ptr.vmem [resolvable:$true] %s159_s22 }
  0x28   : > { %s149_s25 = scalar_lea.sflag [#allocation3], %s148_s7  ;;  %s501_s26 = scalar_lea.hbm %s710_s17, 128 }
  0x29   : > { %p502_p5 = scmp.ne.s32.totalorder %s710_s17, %s501_s26  ;;  %p503_p7 = pneg %p712_p11 }
  0x2a   : > { %s506_s29 = scalar_lea.hbm %s789_s0, 256  ;;  %p507_p10 = scmp.lt.s32.totalorder %s710_s17, %s789_s0 }
  0x2b   : > { %p504_p9 = pnand %p503_p7, %p502_p5  ;;  %p508_p2 = scmp.lt.s32.totalorder %s506_s29, %s501_s26 }
  0x2d   : > { %p505_p12 = pneg %p504_p9  ;;  %p509_p13 = por %p508_p2, %p507_p10 }
  0x2f   : > { %p510_p0 = pnand %p509_p13, %p505_p12 }
  0x31   : > { %513 = shalt.err (!%p510_p0)
}
  0x32   : > { %s514_s8 = scalar_lea.vmem %s160_s22, 128  ;;  %s602_s7 = smov [#allocation2]  }
  0x33   : > { %p515_p1 = scmp.ne.s32.totalorder %s160_s22, %s514_s8  ;;  %s519_s9 = sshll.u32 %s602_s7, 4  ;;  %s520_s9 = int_to_ptr.vmem [resolvable:$false] %s519_s9 }
  0x34   : > { %s521_s10 = scalar_lea.vmem %s520_s9, 256  ;;  %p522_p5 = scmp.lt.s32.totalorder %s160_s22, %s520_s9 }
  0x35   : > { %p517_p6 = pnand %p515_p1, %p503_p7  ;;  %p523_p9 = scmp.lt.s32.totalorder %s521_s10, %s514_s8 }
  0x37   : > { %p518_p3 = pneg %p517_p6  ;;  %p524_p4 = por %p523_p9, %p522_p5 }
  0x39   : > { %p525_p8 = pnand %p524_p4, %p518_p3 }
  0x3b   : > { %528 = shalt.err (!%p525_p8)
}
  0x3c   : > { %429 = dma.hbm_to_vmem [thread:$0]  (!%p712_p11), %s710_s17, 128, %s160_s22, %s149_s25  }
  0x3d   : > { %p804_p12 = scmp.ne.s32.totalorder %s799_s20, 0 }
  0x3e   : > { %s733_s11 = sand.u32 (!%p804_p12), 1, %s589_s13   ;;  %p805_p1 = scmp.ne.s32.totalorder (!%p804_p12), %s797_s18, 0 }
  0x3f   : > { %168 = sbr.rel (%p804_p12) target bundleno = 289 (0x121), region = 32  ;;  %s389_s21 = sshll.u32 (!%p804_p12), %s733_s11, 3 }
  0x40   : > { %s171_s26 = scalar_lea.sflag (!%p804_p12), [#allocation3], %s733_s11  ;;  %s174_s27 = scalar_lea.vmem (!%p804_p12), [#allocation2], %s389_s21 }
  0x44   : > { %572 = dma.done.wait (%p805_p1), %s171_s26, 128  }
  0x45   : > { %574 = vsyncadd (%p805_p1), %s171_s26, 4294967168  ;;  %p806_p4 = scmp.eq.s32.totalorder %s647_s16, 0 }
  0x47   : > { %576 = dma.done.wait (%p806_p4), [#allocation6], 512   ;;  %p807_p6 = pmov %p806_p4 }
  0x48   : > { %v603_v0 = vmov 0.0   ;;  %vm604_vm0 = vmmov 0   ;;  %v205_v1 = vld [vmem:[#allocation5 + $0x18] sm:$0xff]  ;;  %v204_v2 = vld [vmem:[#allocation5 + $0x10] sm:$0xff]  ;;  %v203_v3 = vld [vmem:[#allocation5 + $0x8] sm:$0xff]  ;;  %vm213_vm1 = vcmask 261120  }
  0x49   : > { %578 = vsyncadd (%p807_p6), [#allocation6], 4294966784  ;;  %403 = vmatprep.subr.mxu0 %v603_v0  ;;  %411 = vmatprep.mubr.msk.f32.mxu0 %vm604_vm0, %v603_v0  ;;  %v202_v4 = vld [vmem:[#allocation5] sm:$0xff]  ;;  %v201_v5 = vld [vmem:[%s174_s27] sm:$0xff]  ;;  %s395_s17 = sshll.u32 %s647_s16, 7  ;;  %s200_s22 = scalar_lea.vmem [#allocation7], %s389_s21 }
  0x4a   : > { %404 = vmatpush3.msra.mxu0 %v205_v1  ;;  %v392_v6 = vld [vmem:[%s791_s2] ss:$0 sm:$0xff]  ;;  %s302_s23 = sshll.u32 %s200_s22, 4  ;;  %s752_s29 = scalar_lea.hbm %s792_s3, %s395_s17  ;;  %s303_s23 = int_to_ptr.vmem [resolvable:$true] %s302_s23 }
  0x4b   : > { %405 = vmatprep.subr.mxu0 %v603_v0  ;;  %s289_s30 = scalar_lea.sflag [#allocation4], %s733_s11  ;;  %s529_s4 = scalar_lea.vmem %s303_s23, 128 }
  0x4c   : > { %406 = vmatpush3.msra.mxu0 %v204_v2  ;;  %p530_p8 = scmp.ne.s32.totalorder %s303_s23, %s529_s4  ;;  %p808_p3 = scmp.ne.s32.totalorder %s802_s6, 0 }
  0x4d   : > { %407 = vmatprep.subr.mxu0 %v603_v0  ;;  %s605_s8 = smov [#allocation7]  }
  0x4e   : > { %408 = vmatpush3.msra.mxu0 %v203_v3  ;;  %p531_p11 = pnand %p530_p8, %p808_p3  ;;  %s533_s16 = sshll.u32 %s605_s8, 4  ;;  %s534_s16 = int_to_ptr.vmem [resolvable:$false] %s533_s16 }
  0x4f   : > { %409 = vmatprep.subr.mxu0 %v603_v0  ;;  %s535_s7 = scalar_lea.vmem %s534_s16, 256  ;;  %p536_p10 = scmp.lt.s32.totalorder %s303_s23, %s534_s16 }
  0x50   : > { %410 = vmatpush3.msra.mxu0 %v202_v4  ;;  %p532_p7 = pneg %p531_p11  ;;  %p537_p2 = scmp.lt.s32.totalorder %s535_s7, %s529_s4 }
  0x51   : > { %412 = vmatmul.mubr.msk.f32.vlgmr.msra.gmra.mxu0 %vm213_vm1, %v201_v5 }
  0x52   : > { %p538_p13 = por %p537_p2, %p536_p10 }
  0x54   : > { %p539_p0 = pnand %p538_p13, %p532_p7 }
 0x111   : > { %v283_v7 = vpop.f32.mrf.mxu0 }
 0x112   : > { %v284_v8 = vadd.f32 %v392_v6, %v283_v7 }
 0x113   : > { %v413_v9 = vpop.f32.mrf.mxu0 }
 0x114   : > { %287 = vst.msk [vmem:[%s200_s22] sm:$0xff] %vm213_vm1, %v284_v8 }
 0x115   : > { %542 = shalt.err (!%p539_p0)
}
 0x116   : > { %s543_s9 = scalar_lea.hbm %s752_s29, 128  ;;  %s547_s21 = scalar_lea.hbm %s792_s3, 256 }
 0x117   : > { %p544_p5 = scmp.ne.s32.totalorder %s752_s29, %s543_s9  ;;  %p548_p1 = scmp.lt.s32.totalorder %s752_s29, %s792_s3 }
 0x118   : > { %p549_p4 = scmp.lt.s32.totalorder %s547_s21, %s543_s9 }
 0x119   : > { %p545_p9 = pnand %p544_p5, %p808_p3 }
 0x11a   : > { %p550_p6 = por %p549_p4, %p548_p1 }
 0x11b   : > { %p546_p12 = pneg %p545_p9 }
 0x11d   : > { %p551_p8 = pnand %p550_p6, %p546_p12 }
 0x11f   : > { %554 = shalt.err (!%p551_p8)
}
 0x120   : > { %420 = dma.vmem_to_hbm [thread:$0]  (%p808_p3), %s303_s23, 128, %s752_s29, %s289_s30  }
 0x121 PF: > { %s314_s18 = sand.u32 1, %s585_s12   ;;  %p809_p11 = scmp.ne.s32.totalorder %s798_s19, 0 }
 0x122   : > { %p810_p7 = scmp.ge.s32.totalorder %s597_s15, 2  ;;  %s315_s20 = scalar_lea.sflag [#allocation4], %s314_s18 }
 0x124   : > { %p431_p10 = pnand %p810_p7, %p809_p11 }
 0x126   : > { %p432_p2 = pneg %p431_p10 }
 0x128   : > { %580 = dma.done.wait (%p432_p2), %s315_s20, 128  }
 0x129   : > { %582 = vsyncadd (%p432_p2), %s315_s20, 4294967168  ;;  %p17_p13 = scmp.ge.s32.totalorder %s680_s24, 4   ;;  %s811_s12 = smov %s589_s13 }
 0x12a   : > { %s812_s13 = smov %s593_s14  ;;  %s813_s14 = smov %s697_s5 }
 0x12b   : > { %s814_s15 = smov %s680_s24  ;;  %19 = sbr.rel (!%p17_p13) target bundleno = 6 (0x6), region = 81 }
 0x130   :  { %320 = vsyncpa [#allocation3], 1 }
 0x131   :  { %322 = vsyncpa [#allocation3 + $0x1], 1 }
 0x132   :  { %323 = vsyncpa [#allocation6], 1 }
 0x133   :  { %324 = vsyncpa [#allocation4], 1 }
 0x134   :  { %326 = vsyncpa [#allocation4 + $0x1], 1 }

</bundles_post_ra>
